<compile_context>
chip_gen: v5e
topology: v5e:2x2
jax: 0.10.0
libtpu: 0.0.40
codegen_flags: <defaults>
</compile_context>

<pallas_src>
import jax
import jax.numpy as jnp
from jax.experimental import pallas as pl
from jax.experimental.pallas import tpu as pltpu


# Hidden widths of ClassicalControlFNN (lin1..lin6 outputs); lin7 -> n_out.
_HIDDEN = (32, 64, 128, 128, 64, 32)
_LANE = 128


def _round_up(v, m):
    return ((v + m - 1) // m) * m


def _make_kernel(n_layers, n_out):
    """Build the fused-MLP kernel as a closure over static layer counts."""

    def kernel(x_ref, w1_ref, wr_ref, b_ref, o_ref):
        # Biases: one (n_layers, 128) f32 slab, loaded once per tile.
        b_all = b_ref[...]                                     # (L, 128) f32

        # Layer 1: (tb, n_in) @ (n_in, 128).  Weights are pre-padded to 128
        # output lanes with zeros, so padded lanes stay exactly 0 after the
        # zero-padded bias add and ReLU.
        h = jnp.dot(x_ref[...].astype(jnp.bfloat16), w1_ref[...],
                    preferred_element_type=jnp.float32)        # (tb, 128) f32
        h = jnp.maximum(h + b_all[0:1, :], 0.0)

        # Layers 2..n_layers: uniform (tb,128) @ (128,128) bf16 matmuls with
        # f32 accumulation.  Zero-padded weight rows/cols keep padded lanes 0.
        for l in range(1, n_layers):
            h = jnp.dot(h.astype(jnp.bfloat16), wr_ref[l - 1],
                        preferred_element_type=jnp.float32)
            h = h + b_all[l:l + 1, :]
            if l < n_layers - 1:
                h = jnp.maximum(h, 0.0)

        # LogSoftmax over the first n_out (valid) lanes only.
        lane = jax.lax.broadcasted_iota(jnp.int32, h.shape, 1)
        valid = lane < n_out
        masked = jnp.where(valid, h, -1e30)
        m = jnp.max(masked, axis=-1, keepdims=True)
        z = h - m
        e = jnp.where(valid, jnp.exp(z), 0.0)
        lse = jnp.log(jnp.sum(e, axis=-1, keepdims=True))
        o_ref[...] = (z - lse)[:, :n_out].astype(o_ref.dtype)

    return kernel


def classical_control_fnn_forward(x, params, *, block_rows=512):
    """Forward pass of ClassicalControlFNN (Discrete action space).

    Args:
      x:       (B, n_in) float32 observations.
      params:  list of (W, b) pairs; W has shape (in_features, out_features)
               (transposed relative to PyTorch nn.Linear), b has shape (out,).
    Returns:
      (B, n_out) log-probabilities, dtype of x.
    """
    B, n_in = x.shape
    n_layers = len(params)
    out_dims = [w.shape[1] for w, _ in params]
    n_out = out_dims[-1]
    assert n_in <= _LANE and max(out_dims) <= _LANE, "feature widths must be <=128"

    # ---- Pack parameters into 3 lane-dense slabs (bf16 weights, f32 biases).
    # bf16 MXU operands -> single-pass matmuls; f32 accumulation keeps accuracy.
    w1 = params[0][0]
    w_first = jnp.zeros((n_in, _LANE), jnp.bfloat16)
    w_first = w_first.at[:, :out_dims[0]].set(w1.astype(jnp.bfloat16))

    w_rest = jnp.zeros((n_layers - 1, _LANE, _LANE), jnp.bfloat16)
    for l in range(1, n_layers):
        w = params[l][0]
        w_rest = w_rest.at[l - 1, :w.shape[0], :w.shape[1]].set(
            w.astype(jnp.bfloat16))

    biases = jnp.zeros((n_layers, _LANE), jnp.float32)
    for l in range(n_layers):
        b = params[l][1]
        biases = biases.at[l, :b.shape[0]].set(b.astype(jnp.float32))

    # ---- Batch tiling: sublane-aligned tile, capped at block_rows, and sized
    # so the grid has >= 2 steps whenever B allows it (v7x dual-TC split).
    # No wrapper-side padding: Pallas masks the ragged last block.
    tb = min(block_rows, _round_up(max(1, -(-B // 2)), 8))
    num_tiles = -(-B // tb)

    kernel = _make_kernel(n_layers, n_out)

    out = pl.pallas_call(
        kernel,
        out_shape=jax.ShapeDtypeStruct((B, n_out), x.dtype),
        grid_spec=pltpu.PrefetchScalarGridSpec(
            num_scalar_prefetch=0,
            grid=(num_tiles,),
            in_specs=[
                pl.BlockSpec((tb, n_in), lambda i: (i, 0)),            # x tile
                pl.BlockSpec((n_in, _LANE), lambda i: (0, 0)),         # W1 slab
                pl.BlockSpec((n_layers - 1, _LANE, _LANE),
                             lambda i: (0, 0, 0)),                     # W2..W7 slab
                pl.BlockSpec((n_layers, _LANE), lambda i: (0, 0)),     # bias slab
            ],
            out_specs=pl.BlockSpec((tb, n_out), lambda i: (i, 0)),
        ),
        compiler_params=pltpu.CompilerParams(
            dimension_semantics=("parallel",),   # batch tiles are independent
            vmem_limit_bytes=32 * 1024 * 1024,
        ),
    )(x, w_first, w_rest, biases)

    return out


def _ref_forward(x, params):
    """Pure-JAX f32 reference for correctness checking."""
    h = x.astype(jnp.float32)
    for w, b in params[:-1]:
        h = jnp.maximum(
            jnp.dot(h, w, precision="highest",
                    preferred_element_type=jnp.float32) + b, 0.0)
    w, b = params[-1]
    logits = jnp.dot(h, w, precision="highest",
                     preferred_element_type=jnp.float32) + b
    return jax.nn.log_softmax(logits, axis=-1)


if __name__ == "__main__":
    key = jax.random.PRNGKey(0)

    # CartPole-like classical-control setup: obs dim 4, Discrete(2) actions.
    batch, n_in, n_out = 8, 4, 2
    dims = (n_in,) + _HIDDEN + (n_out,)          # 8 entries -> 7 linear layers

    n_layers = len(dims) - 1
    keys = jax.random.split(key, 2 * n_layers + 1)

    params = []
    for l, (fan_in, fan_out) in enumerate(zip(dims[:-1], dims[1:])):
        wk, bk = keys[2 * l], keys[2 * l + 1]
        std = (2.0 / (fan_in + fan_out)) ** 0.5   # xavier-normal-like scale
        w = std * jax.random.normal(wk, (fan_in, fan_out), dtype=jnp.float32)
        b = 0.01 * jax.random.normal(bk, (fan_out,), dtype=jnp.float32)
        params.append((w, b))

    x = jax.random.normal(keys[-1], (batch, n_in), dtype=jnp.float32)

    y = classical_control_fnn_forward(x, params)
    jax.block_until_ready(y)

    y_ref = _ref_forward(x, params)

    assert y.shape == (batch, n_out), (y.shape, (batch, n_out))
    assert y.dtype == x.dtype, (y.dtype, x.dtype)
    max_err = float(jnp.max(jnp.abs(y - y_ref)))
    # bf16 MXU operands through 7 layers: allow a slightly looser tolerance.
    assert jnp.allclose(y, y_ref, atol=5e-2, rtol=5e-2), f"max abs err {max_err}"
    # Rows of a log-softmax output must exponentiate and sum to 1.
    assert bool(jnp.allclose(jnp.sum(jnp.exp(y), axis=-1), 1.0, atol=1e-3))

    print("KERNEL_OK")
</pallas_src>

<mosaic_0001>
module attributes {stable_mosaic.version = 11 : i64} {
  func.func @kernel(%arg0: i32, %arg1: memref<8x4xf32, #tpu.memory_space<vmem>>, %arg2: memref<4x128xbf16, #tpu.memory_space<vmem>>, %arg3: memref<6x128x128xbf16, #tpu.memory_space<vmem>>, %arg4: memref<7x128xf32, #tpu.memory_space<vmem>>, %arg5: memref<8x2xf32, #tpu.memory_space<vmem>>) attributes {dimension_semantics = [#tpu.dimension_semantics<parallel>], iteration_bounds = array<i64: 1>, scalar_prefetch = 0 : i64, scratch_operands = 0 : i64, tpu.core_type = #tpu.core_type<tc>, window_params = [{transform_indices = @transform_0, window_bounds = array<i64: 8, 4>}, {pipeline_mode = #tpu.pipeline_mode<synchronous>, transform_indices = @transform_1, window_bounds = array<i64: 4, 128>}, {pipeline_mode = #tpu.pipeline_mode<synchronous>, transform_indices = @transform_2, window_bounds = array<i64: 6, 128, 128>}, {pipeline_mode = #tpu.pipeline_mode<synchronous>, transform_indices = @transform_3, window_bounds = array<i64: 7, 128>}, {transform_indices = @transform_4, window_bounds = array<i64: 8, 2>}]} {
    %c0 = arith.constant 0 : index
    %c0_0 = arith.constant 0 : index
    %0 = vector.load %arg4[%c0, %c0_0] : memref<7x128xf32, #tpu.memory_space<vmem>>, vector<7x128xf32>
    %c0_1 = arith.constant 0 : index
    %c0_2 = arith.constant 0 : index
    %1 = vector.load %arg1[%c0_1, %c0_2] : memref<8x4xf32, #tpu.memory_space<vmem>>, vector<8x4xf32>
    %2 = arith.truncf %1 : vector<8x4xf32> to vector<8x4xbf16>
    %c0_3 = arith.constant 0 : index
    %c0_4 = arith.constant 0 : index
    %3 = vector.load %arg2[%c0_3, %c0_4] : memref<4x128xbf16, #tpu.memory_space<vmem>>, vector<4x128xbf16>
    %cst = arith.constant dense<0.000000e+00> : vector<8x128xf32>
    %4 = tpu.matmul %2, %3, %cst {dimension_numbers = #tpu.dot_dimension_numbers<[1], [0], [0], [1], [0, 0, 1, 1], [], []>} : vector<8x4xbf16>, vector<4x128xbf16>, vector<8x128xf32> -> vector<8x128xf32>
    %5 = vector.extract_strided_slice %0 {offsets = [0, 0], sizes = [1, 128], strides = [1, 1]} : vector<7x128xf32> to vector<1x128xf32>
    %6 = vector.broadcast %5 : vector<1x128xf32> to vector<8x128xf32>
    %7 = arith.addf %4, %6 : vector<8x128xf32>
    %cst_5 = arith.constant 0.000000e+00 : f32
    %8 = vector.broadcast %cst_5 : f32 to vector<8x128xf32>
    %9 = arith.maximumf %7, %8 : vector<8x128xf32>
    %10 = arith.truncf %9 : vector<8x128xf32> to vector<8x128xbf16>
    %c0_6 = arith.constant 0 : index
    %c0_7 = arith.constant 0 : index
    %c0_8 = arith.constant 0 : index
    %11 = vector.load %arg3[%c0_6, %c0_7, %c0_8] : memref<6x128x128xbf16, #tpu.memory_space<vmem>>, vector<1x128x128xbf16>
    %12 = vector.shape_cast %11 : vector<1x128x128xbf16> to vector<128x128xbf16>
    %cst_9 = arith.constant dense<0.000000e+00> : vector<8x128xf32>
    %13 = tpu.matmul %10, %12, %cst_9 {dimension_numbers = #tpu.dot_dimension_numbers<[1], [0], [0], [1], [0, 0, 1, 1], [], []>} : vector<8x128xbf16>, vector<128x128xbf16>, vector<8x128xf32> -> vector<8x128xf32>
    %14 = vector.extract_strided_slice %0 {offsets = [1, 0], sizes = [1, 128], strides = [1, 1]} : vector<7x128xf32> to vector<1x128xf32>
    %15 = vector.broadcast %14 : vector<1x128xf32> to vector<8x128xf32>
    %16 = arith.addf %13, %15 : vector<8x128xf32>
    %cst_10 = arith.constant 0.000000e+00 : f32
    %17 = vector.broadcast %cst_10 : f32 to vector<8x128xf32>
    %18 = arith.maximumf %16, %17 : vector<8x128xf32>
    %19 = arith.truncf %18 : vector<8x128xf32> to vector<8x128xbf16>
    %c1 = arith.constant 1 : index
    %c0_11 = arith.constant 0 : index
    %c0_12 = arith.constant 0 : index
    %20 = vector.load %arg3[%c1, %c0_11, %c0_12] : memref<6x128x128xbf16, #tpu.memory_space<vmem>>, vector<1x128x128xbf16>
    %21 = vector.shape_cast %20 : vector<1x128x128xbf16> to vector<128x128xbf16>
    %cst_13 = arith.constant dense<0.000000e+00> : vector<8x128xf32>
    %22 = tpu.matmul %19, %21, %cst_13 {dimension_numbers = #tpu.dot_dimension_numbers<[1], [0], [0], [1], [0, 0, 1, 1], [], []>} : vector<8x128xbf16>, vector<128x128xbf16>, vector<8x128xf32> -> vector<8x128xf32>
    %23 = vector.extract_strided_slice %0 {offsets = [2, 0], sizes = [1, 128], strides = [1, 1]} : vector<7x128xf32> to vector<1x128xf32>
    %24 = vector.broadcast %23 : vector<1x128xf32> to vector<8x128xf32>
    %25 = arith.addf %22, %24 : vector<8x128xf32>
    %cst_14 = arith.constant 0.000000e+00 : f32
    %26 = vector.broadcast %cst_14 : f32 to vector<8x128xf32>
    %27 = arith.maximumf %25, %26 : vector<8x128xf32>
    %28 = arith.truncf %27 : vector<8x128xf32> to vector<8x128xbf16>
    %c2 = arith.constant 2 : index
    %c0_15 = arith.constant 0 : index
    %c0_16 = arith.constant 0 : index
    %29 = vector.load %arg3[%c2, %c0_15, %c0_16] : memref<6x128x128xbf16, #tpu.memory_space<vmem>>, vector<1x128x128xbf16>
    %30 = vector.shape_cast %29 : vector<1x128x128xbf16> to vector<128x128xbf16>
    %cst_17 = arith.constant dense<0.000000e+00> : vector<8x128xf32>
    %31 = tpu.matmul %28, %30, %cst_17 {dimension_numbers = #tpu.dot_dimension_numbers<[1], [0], [0], [1], [0, 0, 1, 1], [], []>} : vector<8x128xbf16>, vector<128x128xbf16>, vector<8x128xf32> -> vector<8x128xf32>
    %32 = vector.extract_strided_slice %0 {offsets = [3, 0], sizes = [1, 128], strides = [1, 1]} : vector<7x128xf32> to vector<1x128xf32>
    %33 = vector.broadcast %32 : vector<1x128xf32> to vector<8x128xf32>
    %34 = arith.addf %31, %33 : vector<8x128xf32>
    %cst_18 = arith.constant 0.000000e+00 : f32
    %35 = vector.broadcast %cst_18 : f32 to vector<8x128xf32>
    %36 = arith.maximumf %34, %35 : vector<8x128xf32>
    %37 = arith.truncf %36 : vector<8x128xf32> to vector<8x128xbf16>
    %c3 = arith.constant 3 : index
    %c0_19 = arith.constant 0 : index
    %c0_20 = arith.constant 0 : index
    %38 = vector.load %arg3[%c3, %c0_19, %c0_20] : memref<6x128x128xbf16, #tpu.memory_space<vmem>>, vector<1x128x128xbf16>
    %39 = vector.shape_cast %38 : vector<1x128x128xbf16> to vector<128x128xbf16>
    %cst_21 = arith.constant dense<0.000000e+00> : vector<8x128xf32>
    %40 = tpu.matmul %37, %39, %cst_21 {dimension_numbers = #tpu.dot_dimension_numbers<[1], [0], [0], [1], [0, 0, 1, 1], [], []>} : vector<8x128xbf16>, vector<128x128xbf16>, vector<8x128xf32> -> vector<8x128xf32>
    %41 = vector.extract_strided_slice %0 {offsets = [4, 0], sizes = [1, 128], strides = [1, 1]} : vector<7x128xf32> to vector<1x128xf32>
    %42 = vector.broadcast %41 : vector<1x128xf32> to vector<8x128xf32>
    %43 = arith.addf %40, %42 : vector<8x128xf32>
    %cst_22 = arith.constant 0.000000e+00 : f32
    %44 = vector.broadcast %cst_22 : f32 to vector<8x128xf32>
    %45 = arith.maximumf %43, %44 : vector<8x128xf32>
    %46 = arith.truncf %45 : vector<8x128xf32> to vector<8x128xbf16>
    %c4 = arith.constant 4 : index
    %c0_23 = arith.constant 0 : index
    %c0_24 = arith.constant 0 : index
    %47 = vector.load %arg3[%c4, %c0_23, %c0_24] : memref<6x128x128xbf16, #tpu.memory_space<vmem>>, vector<1x128x128xbf16>
    %48 = vector.shape_cast %47 : vector<1x128x128xbf16> to vector<128x128xbf16>
    %cst_25 = arith.constant dense<0.000000e+00> : vector<8x128xf32>
    %49 = tpu.matmul %46, %48, %cst_25 {dimension_numbers = #tpu.dot_dimension_numbers<[1], [0], [0], [1], [0, 0, 1, 1], [], []>} : vector<8x128xbf16>, vector<128x128xbf16>, vector<8x128xf32> -> vector<8x128xf32>
    %50 = vector.extract_strided_slice %0 {offsets = [5, 0], sizes = [1, 128], strides = [1, 1]} : vector<7x128xf32> to vector<1x128xf32>
    %51 = vector.broadcast %50 : vector<1x128xf32> to vector<8x128xf32>
    %52 = arith.addf %49, %51 : vector<8x128xf32>
    %cst_26 = arith.constant 0.000000e+00 : f32
    %53 = vector.broadcast %cst_26 : f32 to vector<8x128xf32>
    %54 = arith.maximumf %52, %53 : vector<8x128xf32>
    %55 = arith.truncf %54 : vector<8x128xf32> to vector<8x128xbf16>
    %c5 = arith.constant 5 : index
    %c0_27 = arith.constant 0 : index
    %c0_28 = arith.constant 0 : index
    %56 = vector.load %arg3[%c5, %c0_27, %c0_28] : memref<6x128x128xbf16, #tpu.memory_space<vmem>>, vector<1x128x128xbf16>
    %57 = vector.shape_cast %56 : vector<1x128x128xbf16> to vector<128x128xbf16>
    %cst_29 = arith.constant dense<0.000000e+00> : vector<8x128xf32>
    %58 = tpu.matmul %55, %57, %cst_29 {dimension_numbers = #tpu.dot_dimension_numbers<[1], [0], [0], [1], [0, 0, 1, 1], [], []>} : vector<8x128xbf16>, vector<128x128xbf16>, vector<8x128xf32> -> vector<8x128xf32>
    %59 = vector.extract_strided_slice %0 {offsets = [6, 0], sizes = [1, 128], strides = [1, 1]} : vector<7x128xf32> to vector<1x128xf32>
    %60 = vector.broadcast %59 : vector<1x128xf32> to vector<8x128xf32>
    %61 = arith.addf %58, %60 : vector<8x128xf32>
    %62 = tpu.iota {dimensions = array<i32: 1>} : vector<8x128xi32>
    %c2_i32 = arith.constant 2 : i32
    %63 = vector.broadcast %c2_i32 : i32 to vector<8x128xi32>
    %64 = arith.cmpi slt, %62, %63 : vector<8x128xi32>
    %cst_30 = arith.constant -1.000000e+30 : f32
    %65 = vector.broadcast %cst_30 : f32 to vector<8x128xf32>
    %66 = arith.select %64, %61, %65 : vector<8x128xi1>, vector<8x128xf32>
    %cst_31 = arith.constant dense<0xFF800000> : vector<8xf32>
    %67 = vector.multi_reduction <maximumf>, %66, %cst_31 [1] : vector<8x128xf32> to vector<8xf32>
    %68 = vector.shape_cast %67 : vector<8xf32> to vector<8x1xf32>
    %69 = vector.broadcast %68 : vector<8x1xf32> to vector<8x128xf32>
    %70 = arith.subf %61, %69 : vector<8x128xf32>
    %71 = math.exp %70 : vector<8x128xf32>
    %cst_32 = arith.constant 0.000000e+00 : f32
    %72 = vector.broadcast %cst_32 : f32 to vector<8x128xf32>
    %73 = arith.select %64, %71, %72 : vector<8x128xi1>, vector<8x128xf32>
    %cst_33 = arith.constant dense<0.000000e+00> : vector<8xf32>
    %74 = vector.multi_reduction <add>, %73, %cst_33 [1] : vector<8x128xf32> to vector<8xf32>
    %75 = vector.shape_cast %74 : vector<8xf32> to vector<8x1xf32>
    %76 = math.log %75 : vector<8x1xf32>
    %77 = vector.broadcast %76 : vector<8x1xf32> to vector<8x128xf32>
    %78 = arith.subf %70, %77 : vector<8x128xf32>
    %79 = vector.extract_strided_slice %78 {offsets = [0, 0], sizes = [8, 2], strides = [1, 1]} : vector<8x128xf32> to vector<8x2xf32>
    %c0_34 = arith.constant 0 : index
    %c0_35 = arith.constant 0 : index
    %80 = vector.load %arg5[%c0_34, %c0_35] : memref<8x2xf32, #tpu.memory_space<vmem>>, vector<8x2xf32>
    tpu.vector_store %arg5[%c0_34, %c0_35], %79 {strides = array<i32>} : memref<8x2xf32, #tpu.memory_space<vmem>>, vector<8x2xf32>,
    return
  }
  func.func @transform_0(%arg0: i32) -> (i32, i32) {
    %c0_i32 = arith.constant 0 : i32
    %c0_i32_0 = arith.constant 0 : i32
    return %arg0, %c0_i32 : i32, i32
  }
  func.func @transform_1(%arg0: i32) -> (i32, i32) {
    %c0_i32 = arith.constant 0 : i32
    %c0_i32_0 = arith.constant 0 : i32
    %c0_i32_1 = arith.constant 0 : i32
    return %c0_i32, %c0_i32_0 : i32, i32
  }
  func.func @transform_2(%arg0: i32) -> (i32, i32, i32) {
    %c0_i32 = arith.constant 0 : i32
    %c0_i32_0 = arith.constant 0 : i32
    %c0_i32_1 = arith.constant 0 : i32
    %c0_i32_2 = arith.constant 0 : i32
    return %c0_i32, %c0_i32_0, %c0_i32_1 : i32, i32, i32
  }
  func.func @transform_3(%arg0: i32) -> (i32, i32) {
    %c0_i32 = arith.constant 0 : i32
    %c0_i32_0 = arith.constant 0 : i32
    %c0_i32_1 = arith.constant 0 : i32
    return %c0_i32, %c0_i32_0 : i32, i32
  }
  func.func @transform_4(%arg0: i32) -> (i32, i32) {
    %c0_i32 = arith.constant 0 : i32
    %c0_i32_0 = arith.constant 0 : i32
    return %arg0, %c0_i32 : i32, i32
  }
}

</mosaic_0001>

<bundles_post_ra>
// kernel: tpu_custom_call.1
= control target key start
LH: loop header
LB: loop body
LE: loop exit
PB: predicated region body
PF: predicated region fallthrough
CT: control target
= control target key end

     0   :  { %9 = vsyncpa [#allocation3], 0  ;;  %s841_s18 = smov [#allocation2]   ;;  %s842_s20 = smov 64   ;;  %s893_s0 = inlined_call_operand.vmem [shape: f32[8,4], index: 0, kind: input, shape index: {}]   ;;  %s894_s1 = inlined_call_operand.vmem [shape: bf16[4,128], index: 1, kind: input, shape index: {}]   ;;  %s895_s2 = inlined_call_operand.hbm [shape: bf16[6,128,128], index: 2, kind: input, shape index: {}]   ;;  %s896_s3 = inlined_call_operand.vmem [shape: f32[7,128], index: 3, kind: input, shape index: {}]   ;;  %s897_s4 = inlined_call_operand.vmem [shape: f32[8,2], index: 4, kind: output, shape index: {}]  }
   0x1   :  { %s18_s17 = sshll.u32 %s895_s2, 4  ;;  %s20_s19 = sshll.u32 %s841_s18, 4  ;;  %s19_s17 = int_to_ptr.hbm [resolvable:$true] %s18_s17  ;;  %s21_s19 = int_to_ptr.vmem [resolvable:$true] %s20_s19 }
   0x2   :  { %s843_s21 = smov 4  }
   0x3   :  { %26 = dma.hbm_to_vmem [thread:$0]  %s19_s17, 6144, %s21_s19, [#allocation3], %s842_s20, %s842_s20, %s843_s21  }
   0x4   :  { %839 = dma.done.wait [#allocation3], 6144  }
   0x5   :  { %840 = vsyncadd [#allocation3], 4294961152  ;;  %vm43_vm0 = vcmask 1041408   ;;  %v37_v0 = vld [vmem:[%s894_s1] sm:$0x3]  ;;  %v767_v2 = vld [vmem:[#allocation2 + $0x38] sm:$0xff] }
   0x6   :  { %v35_v1 = vld [vmem:[%s893_s0] sm:$0xff]  ;;  %v45_v3 = vsel %vm43_vm0, %v37_v0, 0  ;;  %vm39_vm1 = vcmask 31744   ;;  %127 = vmatpush.bf16.msra.mxu1 %v767_v2  ;;  %v766_v5 = vld [vmem:[#allocation2 + $0x30] sm:$0xff]  ;;  %v765_v6 = vld [vmem:[#allocation2 + $0x28] sm:$0xff]  ;;  %vm560_vm3 = vcmask 15360  }
   0x7   :  { %v36_v4 = vpack.c.bf16 %v35_v1, %v35_v1  ;;  %54 = vmatpush.bf16.msra.mxu0 %v45_v3  ;;  %v764_v7 = vld [vmem:[#allocation2 + $0x20] sm:$0xff]  ;;  %v763_v8 = vld [vmem:[#allocation2 + $0x18] sm:$0xff]  ;;  %v762_v9 = vld [vmem:[#allocation2 + $0x10] sm:$0xff] }
   0x8   :  { %v761_v10 = vld [vmem:[#allocation2 + $0x8] sm:$0xff]  ;;  %v760_v11 = vld [vmem:[#allocation2] sm:$0xff]  ;;  %v775_v12 = vld [vmem:[#allocation2 + $0x78] sm:$0xff] }
   0x9   :  { %208 = vmatpush.bf16.msra.mxu2 %v775_v12  ;;  %v774_v13 = vld [vmem:[#allocation2 + $0x70] sm:$0xff]  ;;  %v773_v14 = vld [vmem:[#allocation2 + $0x68] sm:$0xff]  ;;  %v772_v15 = vld [vmem:[#allocation2 + $0x60] sm:$0xff] }
   0xa   :  { %567 = vmatmul.msk.bf16.vlgmr.msra.gmra.mxu0 %vm39_vm1, %v36_v4  ;;  %128 = vmatpush.bf16.msra.mxu1 %v766_v5  ;;  %v771_v16 = vld [vmem:[#allocation2 + $0x58] sm:$0xff]  ;;  %v881_v17 = vld [vmem:[%s896_s3] sm:$0x7f]  ;;  %v770_v18 = vld [vmem:[#allocation2 + $0x50] sm:$0xff] }
   0xb   :  { %v38_v19 = vperm.slane %v881_v17, 0  ;;  %v769_v25 = vld [vmem:[#allocation2 + $0x48] sm:$0xff]  ;;  %v768_v26 = vld [vmem:[#allocation2 + $0x40] sm:$0xff]  ;;  %v783_v27 = vld [vmem:[#allocation2 + $0xb8] sm:$0xff]  ;;  %v78_v33 = vperm.slane %v881_v17, 1  ;;  %v159_v47 = vperm.slane %v881_v17, 2 }
   0xc   :  { %289 = vmatpush.bf16.msra.mxu3 %v783_v27  ;;  %v782_v28 = vld [vmem:[#allocation2 + $0xb0] sm:$0xff]  ;;  %v781_v29 = vld [vmem:[#allocation2 + $0xa8] sm:$0xff]  ;;  %v780_v30 = vld [vmem:[#allocation2 + $0xa0] sm:$0xff]  ;;  %v240_v61 = vperm.slane %v881_v17, 3 }
   0xd   :  { %209 = vmatpush.bf16.msra.mxu2 %v774_v13  ;;  %v779_v31 = vld [vmem:[#allocation2 + $0x98] sm:$0xff]  ;;  %v778_v32 = vld [vmem:[#allocation2 + $0x90] sm:$0xff]  ;;  %v777_v39 = vld [vmem:[#allocation2 + $0x88] sm:$0xff] }
   0xe   :  { %129 = vmatpush.bf16.msra.mxu1 %v765_v6  ;;  %v776_v40 = vld [vmem:[#allocation2 + $0x80] sm:$0xff]  ;;  %v791_v41 = vld [vmem:[#allocation2 + $0xf8] sm:$0xff]  ;;  %v790_v42 = vld [vmem:[#allocation2 + $0xf0] sm:$0xff] }
   0xf   :  { %370 = vmatpush.bf16.msrb.mxu0 %v791_v41  ;;  %v789_v43 = vld [vmem:[#allocation2 + $0xe8] sm:$0xff]  ;;  %v788_v44 = vld [vmem:[#allocation2 + $0xe0] sm:$0xff]  ;;  %v787_v45 = vld [vmem:[#allocation2 + $0xd8] sm:$0xff] }
  0x10   :  { %290 = vmatpush.bf16.msra.mxu3 %v782_v28  ;;  %v786_v46 = vld [vmem:[#allocation2 + $0xd0] sm:$0xff]  ;;  %v785_v53 = vld [vmem:[#allocation2 + $0xc8] sm:$0xff]  ;;  %v784_v54 = vld [vmem:[#allocation2 + $0xc0] sm:$0xff]  ;;  %v483_v28 = vperm.slane %v881_v17, 6 }
  0x11   :  { %210 = vmatpush.bf16.msra.mxu2 %v773_v14  ;;  %v799_v55 = vld [vmem:[#allocation2 + $0x138] sm:$0xff]  ;;  %v798_v56 = vld [vmem:[#allocation2 + $0x130] sm:$0xff]  ;;  %v797_v57 = vld [vmem:[#allocation2 + $0x128] sm:$0xff] }
  0x12   :  { %130 = vmatpush.bf16.msra.mxu1 %v764_v7  ;;  %v796_v58 = vld [vmem:[#allocation2 + $0x120] sm:$0xff]  ;;  %v795_v59 = vld [vmem:[#allocation2 + $0x118] sm:$0xff]  ;;  %v794_v60 = vld [vmem:[#allocation2 + $0x110] sm:$0xff] }
  0x13   :  { %371 = vmatpush.bf16.msrb.mxu0 %v790_v42  ;;  %v793_v3 = vld [vmem:[#allocation2 + $0x108] sm:$0xff]  ;;  %v792_v4 = vld [vmem:[#allocation2 + $0x100] sm:$0xff]  ;;  %v807_v5 = vld [vmem:[#allocation2 + $0x178] sm:$0xff] }
  0x14   :  { %291 = vmatpush.bf16.msra.mxu3 %v781_v29  ;;  %v806_v6 = vld [vmem:[#allocation2 + $0x170] sm:$0xff]  ;;  %v805_v7 = vld [vmem:[#allocation2 + $0x168] sm:$0xff] }
  0x15   :  { %211 = vmatpush.bf16.msra.mxu2 %v772_v15 }
  0x16   :  { %131 = vmatpush.bf16.msra.mxu1 %v763_v8  ;;  %v804_v8 = vld [vmem:[#allocation2 + $0x160] sm:$0xff] }
  0x17   :  { %372 = vmatpush.bf16.msrb.mxu0 %v789_v43 }
  0x18   :  { %292 = vmatpush.bf16.msra.mxu3 %v780_v30 }
  0x19   :  { %212 = vmatpush.bf16.msra.mxu2 %v771_v16 }
  0x1a   :  { %132 = vmatpush.bf16.msra.mxu1 %v762_v9  ;;  %v803_v9 = vld [vmem:[#allocation2 + $0x158] sm:$0xff] }
  0x1b   :  { %373 = vmatpush.bf16.msrb.mxu0 %v788_v44 }
  0x1c   :  { %293 = vmatpush.bf16.msra.mxu3 %v779_v31 }
  0x1d   :  { %213 = vmatpush.bf16.msra.mxu2 %v770_v18  ;;  %v801_v18 = vld [vmem:[#allocation2 + $0x148] sm:$0xff] }
  0x1e   :  { %133 = vmatpush.bf16.msra.mxu1 %v761_v10  ;;  %v802_v10 = vld [vmem:[#allocation2 + $0x150] sm:$0xff] }
  0x1f   :  { %374 = vmatpush.bf16.msrb.mxu0 %v787_v45 }
  0x20   :  { %294 = vmatpush.bf16.msra.mxu3 %v778_v32 }
  0x21   :  { %214 = vmatpush.bf16.msra.mxu2 %v769_v25 }
  0x22   :  { %134 = vmatpush.bf16.msra.mxu1 %v760_v11  ;;  %v321_v11 = vperm.slane %v881_v17, 4 }
  0x23   :  { %375 = vmatpush.bf16.msrb.mxu0 %v786_v46 }
  0x24   :  { %295 = vmatpush.bf16.msra.mxu3 %v777_v39 }
  0x25   :  { %215 = vmatpush.bf16.msra.mxu2 %v768_v26  ;;  %v545_v26 = vlaneseq }
  0x26   :  { %451 = vmatpush.bf16.msrb.mxu1 %v799_v55 }
  0x27   :  { %376 = vmatpush.bf16.msrb.mxu0 %v785_v53  ;;  %v546_v27 = vand.u32 127, %v545_v26 }
  0x28   :  { %296 = vmatpush.bf16.msra.mxu3 %v776_v40 }
  0x29   :  { %532 = vmatpush.bf16.msrb.mxu2 %v807_v5  ;;  %vm547_vm2 = vcmp.lt.s32.totalorder %v546_v27, 2 }
  0x2a   :  { %452 = vmatpush.bf16.msrb.mxu1 %v798_v56 }
  0x2b   :  { %377 = vmatpush.bf16.msrb.mxu0 %v784_v54 }
  0x2d   :  { %533 = vmatpush.bf16.msrb.mxu2 %v806_v6 }
  0x2e   :  { %453 = vmatpush.bf16.msrb.mxu1 %v797_v57 }
  0x31   :  { %534 = vmatpush.bf16.msrb.mxu2 %v805_v7 }
  0x32   :  { %454 = vmatpush.bf16.msrb.mxu1 %v796_v58 }
  0x35   :  { %535 = vmatpush.bf16.msrb.mxu2 %v804_v8 }
  0x36   :  { %455 = vmatpush.bf16.msrb.mxu1 %v795_v59 }
  0x39   :  { %536 = vmatpush.bf16.msrb.mxu2 %v803_v9 }
  0x3a   :  { %456 = vmatpush.bf16.msrb.mxu1 %v794_v60 }
  0x3d   :  { %537 = vmatpush.bf16.msrb.mxu2 %v802_v10 }
  0x3e   :  { %457 = vmatpush.bf16.msrb.mxu1 %v793_v3 }
  0x41   :  { %538 = vmatpush.bf16.msrb.mxu2 %v801_v18 }
  0x42   :  { %458 = vmatpush.bf16.msrb.mxu1 %v792_v4 }
  0x87   :  { %v56_v20 = vpop.f32.mrf.mxu0 }
  0x88   :  { %v57_v21 = vadd.f32 %v56_v20, %v38_v19  ;;  %v800_v19 = vld [vmem:[#allocation2 + $0x140] sm:$0xff]  ;;  %v402_v20 = vperm.slane %v881_v17, 5 }
  0x89   :  { %539 = vmatpush.bf16.msrb.mxu2 %v800_v19 }
  0x8a   :  { %v60_v22 = vmax.f32 %v57_v21, 0.0 }
  0x8c   :  { %v61_v23 = vpack.c.bf16 %v60_v22, %v60_v22 }
  0x8e   :  { %135 = vmatmul.bf16.vlgmr.msra.gmra.mxu1 %v61_v23 }
  0x8f   :  { %v58_v24 = vpop.f32.mrf.mxu0 }
 0x10b   :  { %v136_v34 = vpop.f32.mrf.mxu1 }
 0x10c   :  { %v137_v35 = vadd.f32 %v136_v34, %v78_v33 }
 0x10e   :  { %v140_v36 = vmax.f32 %v137_v35, 0.0 }
 0x110   :  { %v141_v37 = vpack.c.bf16 %v140_v36, %v140_v36 }
 0x112   :  { %216 = vmatmul.bf16.vlgmr.msra.gmra.mxu2 %v141_v37 }
 0x113   :  { %v138_v38 = vpop.f32.mrf.mxu1 }
 0x195   :  { %v217_v48 = vpop.f32.mrf.mxu2 }
 0x196   :  { %v218_v49 = vadd.f32 %v217_v48, %v159_v47 }
 0x198   :  { %v221_v50 = vmax.f32 %v218_v49, 0.0 }
 0x19a   :  { %v222_v51 = vpack.c.bf16 %v221_v50, %v221_v50 }
 0x19c   :  { %297 = vmatmul.bf16.vlgmr.msra.gmra.mxu3 %v222_v51 }
 0x19d   :  { %v219_v52 = vpop.f32.mrf.mxu2 }
 0x21f   :  { %v298_v62 = vpop.f32.mrf.mxu3 }
 0x220   :  { %v299_v63 = vadd.f32 %v298_v62, %v240_v61 }
 0x222   :  { %v302_v0 = vmax.f32 %v299_v63, 0.0 }
 0x224   :  { %v303_v1 = vpack.c.bf16 %v302_v0, %v302_v0 }
 0x226   :  { %378 = vmatmul.bf16.vlgmr.msrb.gmra.mxu0 %v303_v1 }
 0x227   :  { %v300_v2 = vpop.f32.mrf.mxu3 }
 0x2a3   :  { %v379_v12 = vpop.f32.mrf.mxu0 }
 0x2a4   :  { %v380_v13 = vadd.f32 %v379_v12, %v321_v11 }
 0x2a6   :  { %v383_v14 = vmax.f32 %v380_v13, 0.0 }
 0x2a8   :  { %v384_v15 = vpack.c.bf16 %v383_v14, %v383_v14 }
 0x2aa   :  { %459 = vmatmul.bf16.vlgmr.msrb.gmra.mxu1 %v384_v15 }
 0x2ab   :  { %v381_v16 = vpop.f32.mrf.mxu0 }
 0x327   :  { %v460_v21 = vpop.f32.mrf.mxu1 }
 0x328   :  { %v461_v22 = vadd.f32 %v460_v21, %v402_v20 }
 0x32a   :  { %v464_v23 = vmax.f32 %v461_v22, 0.0 }
 0x32c   :  { %v465_v24 = vpack.c.bf16 %v464_v23, %v464_v23 }
 0x32e   :  { %540 = vmatmul.bf16.vlgmr.msrb.gmra.mxu2 %v465_v24 }
 0x32f   :  { %v462_v25 = vpop.f32.mrf.mxu1 }
 0x3b1   :  { %v541_v29 = vpop.f32.mrf.mxu2 }
 0x3b2   :  { %v542_v30 = vadd.f32 %v541_v29, %v483_v28 }
 0x3b4   :  { %v548_v31 = vsel %vm547_vm2, %v542_v30, -1e+30 }
 0x3b5   :  { %549 = vmax.xlane.f32.xlu0 %v548_v31 }
 0x3b9   :  { %v543_v32 = vpop.f32.mrf.mxu2 }
 0x428   :  { %v550_v33 = vpop.xlane.xlu0 %549 }
 0x429   :  { %v551_v34 = vsub.f32 %v542_v30, %v550_v33 }
 0x42b   :  { %v552_v35 = vmul.f32 1.442695, %v551_v34 }
 0x42d   :  { %811 = vpow2.f32 %v552_v35 }
 0x433   :  { %v812_v36 = vpop.eup %811 }
 0x434   :  { %v554_v37 = vsel %vm547_vm2, %v812_v36, 0.0 }
 0x435   :  { %555 = vadd.xlane.f32.xlu0 %v554_v37 }
 0x4a8   :  { %v556_v38 = vpop.xlane.xlu0 %555 }
 0x4a9   :  { %813 = vlog2.f32 %v556_v38 }
 0x4af   :  { %v814_v39 = vpop.eup %813 }
 0x4b0   :  { %v558_v40 = vmul.f32 0.6931472, %v814_v39 }
 0x4b2   :  { %v559_v41 = vsub.f32 %v551_v34, %v558_v40 }
 0x4b4   :  { %561 = vst.msk [vmem:[%s897_s4] sm:$0xff] %vm560_vm3, %v559_v41 }
 0x4b5   :  { %566 = vsyncpa [#allocation3], 1 }

</bundles_post_ra>
